<compile_context>
chip_gen: v6e
topology: v6e:2x2x1
jax: 0.10.0
libtpu: 0.0.40
codegen_flags: <defaults>
</compile_context>

<pallas_src>
import functools

import numpy as np
import jax
import jax.numpy as jnp
from jax import lax
from jax.experimental import pallas as pl
from jax.experimental.pallas import tpu as pltpu

N = 2          # batch
IN_F = 1024    # fc in features
HID = 128      # fc out features == conv input width
C_OUT = 16     # conv out channels
W_OUT = 65     # (128 + 2*1 - 2)//2 + 1
H_OUT = 1      # (1   + 2*1 - 2)//2 + 1
WPAD = 128     # lane-padded conv width used for the tap selection

# Stride-2 tap-selection matrix, built once with numpy (compile-time constant).
#   sel[:, :WPAD]  -> tap0: output col j reads fc col 2j-1 (j=0 and j>=65 -> 0)
#   sel[:, WPAD:]  -> tap1: output col j reads fc col 2j   (j>=65 -> 0)
_k = np.arange(HID)[:, None]
_j = np.arange(WPAD)[None, :]
_SEL = np.concatenate([(_k == 2 * _j - 1), (_k == 2 * _j)],
                      axis=1).astype(np.float32)          # (128, 256)


def fused_kernel(x_ref, wfc_ref, sel_ref, consts_ref, out_ref):
    """fc (bf16 MXU) -> conv-as-two-taps (one bf16 MXU dot + VPU FMA) -> relu/clamp."""
    # fc without bias (bias folded into consts): bf16 x bf16, f32 accumulate.
    z = jnp.dot(x_ref[...], wfc_ref[...],
                preferred_element_type=jnp.float32)                 # (N, 128) f32
    # Both conv taps with one MXU dot; 0/1 selection values are exact in bf16.
    taps = jnp.dot(z.astype(jnp.bfloat16), sel_ref[...],
                   preferred_element_type=jnp.float32)              # (N, 256) f32

    w10 = consts_ref[0:C_OUT, :]              # (16,128) tap weight for col 2j-1
    w11 = consts_ref[C_OUT:2 * C_OUT, :]      # (16,128) tap weight for col 2j
    btot = consts_ref[2 * C_OUT:3 * C_OUT, :]  # (16,128) folded fc+conv bias

    # Static loop over the 2 batch rows: one (16,128) block live at a time.
    for n in range(N):
        t0 = jnp.broadcast_to(taps[n:n + 1, 0:WPAD], (C_OUT, WPAD))
        t1 = jnp.broadcast_to(taps[n:n + 1, WPAD:2 * WPAD], (C_OUT, WPAD))
        v2 = t0 * w10 + t1 * w11 + btot                  # conv result
        # v3 = clamp_min(v2, 1) is dead code in the reference module.
        v5 = jnp.minimum(jnp.maximum(v2, 0.0), -1.0)     # relu, then clamp_max(-1)
        out_ref[pl.ds(n * C_OUT, C_OUT), :] = v5[:, :W_OUT]


def const_kernel(out_ref):
    """Fast path: relu(x) >= 0 followed by clamp_max(-1) == -1 for finite x."""
    out_ref[...] = jnp.full(out_ref.shape, -1.0, dtype=out_ref.dtype)


def prepare_params(wfc, bfc, conv_w, conv_b):
    """One-time weight folding (call once, outside the hot path).

    Returns:
      wfc_bf16: (1024, 128) bf16 fc weight (pre-transposed, no bias).
      consts:   (48, 128) f32 = [w10 bcast; w11 bcast; btot], where
                btot[c, j] = w10[c]*bfc[2j-1] + w11[c]*bfc[2j] + bconv[c]
                (out-of-range fc columns are the conv zero pad).
    """
    w10 = conv_w[:, 0, 1, 0]                  # (16,) tap on fc col 2j-1
    w11 = conv_w[:, 0, 1, 1]                  # (16,) tap on fc col 2j
    j = jnp.arange(W_OUT)
    idx_a = 2 * j - 1
    idx_b = 2 * j
    a = jnp.where(idx_a >= 0, bfc[jnp.clip(idx_a, 0, HID - 1)], 0.0)
    b = jnp.where(idx_b <= HID - 1, bfc[jnp.clip(idx_b, 0, HID - 1)], 0.0)
    btot = w10[:, None] * a[None, :] + w11[:, None] * b[None, :] + conv_b[:, None]
    btot = jnp.pad(btot, ((0, 0), (0, WPAD - W_OUT)))               # (16, 128)
    consts = jnp.concatenate(
        [jnp.broadcast_to(w10[:, None], (C_OUT, WPAD)),
         jnp.broadcast_to(w11[:, None], (C_OUT, WPAD)),
         btot], axis=0).astype(jnp.float32)                          # (48, 128)
    return wfc.astype(jnp.bfloat16), consts


@functools.partial(jax.jit, static_argnames=("constant_fold",))
def forward(x, wfc_bf16, consts, constant_fold=True):
    if constant_fold:
        # Output is a compile-time constant (-1 everywhere) for finite inputs.
        flat = pl.pallas_call(
            const_kernel,
            out_shape=jax.ShapeDtypeStruct((N * C_OUT, W_OUT), jnp.float32),
            out_specs=pl.BlockSpec(memory_space=pltpu.MemorySpace.VMEM),
        )()
    else:
        flat = pl.pallas_call(
            fused_kernel,
            out_shape=jax.ShapeDtypeStruct((N * C_OUT, W_OUT), jnp.float32),
            in_specs=[pl.BlockSpec(memory_space=pltpu.MemorySpace.VMEM)] * 4,
            out_specs=pl.BlockSpec(memory_space=pltpu.MemorySpace.VMEM),
        )(x.astype(jnp.bfloat16), wfc_bf16,
          jnp.asarray(_SEL, dtype=jnp.bfloat16), consts)
    # (N*C_OUT, W_OUT) -> NCHW (N, C_OUT, 1, W_OUT): identical element order,
    # so this reshape is a bitcast (no extra HBM round trip).
    return flat.reshape(N, C_OUT, H_OUT, W_OUT)


def reference(x, wfc, bfc, conv_w, conv_b):
    v1 = x @ wfc + bfc
    v1n = v1.reshape(N, 1, 1, HID)
    v2 = lax.conv_general_dilated(
        v1n, conv_w, window_strides=(2, 2), padding=((1, 1), (1, 1)),
        dimension_numbers=("NCHW", "OIHW", "NCHW"))
    v2 = v2 + conv_b.reshape(1, C_OUT, 1, 1)
    return jnp.minimum(jnp.maximum(v2, 0.0), -1.0)


if __name__ == "__main__":
    key = jax.random.PRNGKey(0)
    kx, kw, kb, kcw, kcb = jax.random.split(key, 5)

    x = jax.random.normal(kx, (N, IN_F), dtype=jnp.float32)
    # Linear(1024, 128): weight stored pre-transposed as (1024, 128)
    wfc = jax.random.normal(kw, (IN_F, HID), dtype=jnp.float32) / jnp.sqrt(IN_F)
    bfc = jax.random.normal(kb, (HID,), dtype=jnp.float32) * 0.01
    # Conv2d(1, 16, 2): weight (O, I, kh, kw)
    conv_w = jax.random.normal(kcw, (C_OUT, 1, 2, 2), dtype=jnp.float32) * 0.5
    conv_b = jax.random.normal(kcb, (C_OUT,), dtype=jnp.float32) * 0.01

    # One-time weight folding (outside the hot path).
    wfc_bf16, consts = prepare_params(wfc, bfc, conv_w, conv_b)

    ref = reference(x, wfc, bfc, conv_w, conv_b)

    out_full = forward(x, wfc_bf16, consts, constant_fold=False)
    jax.block_until_ready(out_full)
    out_fast = forward(x, wfc_bf16, consts, constant_fold=True)
    jax.block_until_ready(out_fast)

    assert out_full.shape == (N, C_OUT, H_OUT, W_OUT)
    assert out_fast.shape == (N, C_OUT, H_OUT, W_OUT)
    assert jnp.allclose(out_full, ref, atol=1e-4), "compute path mismatch"
    assert jnp.allclose(out_fast, ref, atol=1e-4), "constant-fold path mismatch"
    print("KERNEL_OK")
</pallas_src>

<mosaic_0001>
module attributes {stable_mosaic.version = 11 : i64} {
  func.func @fused_kernel(%arg0: memref<2x1024xbf16, #tpu.memory_space<vmem>>, %arg1: memref<1024x128xbf16, #tpu.memory_space<vmem>>, %arg2: memref<128x256xbf16, #tpu.memory_space<vmem>>, %arg3: memref<48x128xf32, #tpu.memory_space<vmem>>, %arg4: memref<32x65xf32, #tpu.memory_space<vmem>>) attributes {dimension_semantics = [], scalar_prefetch = 0 : i64, scratch_operands = 0 : i64, tpu.core_type = #tpu.core_type<tc>} {
    %c0 = arith.constant 0 : index
    %c0_0 = arith.constant 0 : index
    %0 = vector.load %arg0[%c0, %c0_0] : memref<2x1024xbf16, #tpu.memory_space<vmem>>, vector<2x1024xbf16>
    %c0_1 = arith.constant 0 : index
    %c0_2 = arith.constant 0 : index
    %1 = vector.load %arg1[%c0_1, %c0_2] : memref<1024x128xbf16, #tpu.memory_space<vmem>>, vector<1024x128xbf16>
    %cst = arith.constant dense<0.000000e+00> : vector<2x128xf32>
    %2 = tpu.matmul %0, %1, %cst {dimension_numbers = #tpu.dot_dimension_numbers<[1], [0], [0], [1], [0, 0, 1, 1], [], []>} : vector<2x1024xbf16>, vector<1024x128xbf16>, vector<2x128xf32> -> vector<2x128xf32>
    %3 = arith.truncf %2 : vector<2x128xf32> to vector<2x128xbf16>
    %c0_3 = arith.constant 0 : index
    %c0_4 = arith.constant 0 : index
    %4 = vector.load %arg2[%c0_3, %c0_4] : memref<128x256xbf16, #tpu.memory_space<vmem>>, vector<128x256xbf16>
    %cst_5 = arith.constant dense<0.000000e+00> : vector<2x256xf32>
    %5 = tpu.matmul %3, %4, %cst_5 {dimension_numbers = #tpu.dot_dimension_numbers<[1], [0], [0], [1], [0, 0, 1, 1], [], []>} : vector<2x128xbf16>, vector<128x256xbf16>, vector<2x256xf32> -> vector<2x256xf32>
    %c0_6 = arith.constant 0 : index
    %c0_7 = arith.constant 0 : index
    %6 = vector.load %arg3[%c0_6, %c0_7] : memref<48x128xf32, #tpu.memory_space<vmem>>, vector<16x128xf32>
    %c16 = arith.constant 16 : index
    %c0_8 = arith.constant 0 : index
    %7 = vector.load %arg3[%c16, %c0_8] : memref<48x128xf32, #tpu.memory_space<vmem>>, vector<16x128xf32>
    %c32 = arith.constant 32 : index
    %c0_9 = arith.constant 0 : index
    %8 = vector.load %arg3[%c32, %c0_9] : memref<48x128xf32, #tpu.memory_space<vmem>>, vector<16x128xf32>
    %9 = vector.extract_strided_slice %5 {offsets = [0, 0], sizes = [1, 128], strides = [1, 1]} : vector<2x256xf32> to vector<1x128xf32>
    %10 = vector.shape_cast %9 : vector<1x128xf32> to vector<1x128xf32>
    %11 = vector.broadcast %10 : vector<1x128xf32> to vector<16x128xf32>
    %12 = vector.extract_strided_slice %5 {offsets = [0, 128], sizes = [1, 128], strides = [1, 1]} : vector<2x256xf32> to vector<1x128xf32>
    %13 = vector.shape_cast %12 : vector<1x128xf32> to vector<1x128xf32>
    %14 = vector.broadcast %13 : vector<1x128xf32> to vector<16x128xf32>
    %15 = arith.mulf %11, %6 : vector<16x128xf32>
    %16 = arith.mulf %14, %7 : vector<16x128xf32>
    %17 = arith.addf %15, %16 : vector<16x128xf32>
    %18 = arith.addf %17, %8 : vector<16x128xf32>
    %cst_10 = arith.constant 0.000000e+00 : f32
    %19 = vector.broadcast %cst_10 : f32 to vector<16x128xf32>
    %20 = arith.maximumf %18, %19 : vector<16x128xf32>
    %cst_11 = arith.constant -1.000000e+00 : f32
    %21 = vector.broadcast %cst_11 : f32 to vector<16x128xf32>
    %22 = arith.minimumf %20, %21 : vector<16x128xf32>
    %23 = vector.extract_strided_slice %22 {offsets = [0, 0], sizes = [16, 65], strides = [1, 1]} : vector<16x128xf32> to vector<16x65xf32>
    %c0_12 = arith.constant 0 : index
    %c0_13 = arith.constant 0 : index
    %24 = vector.load %arg4[%c0_12, %c0_13] : memref<32x65xf32, #tpu.memory_space<vmem>>, vector<16x65xf32>
    tpu.vector_store %arg4[%c0_12, %c0_13], %23 {strides = array<i32>} : memref<32x65xf32, #tpu.memory_space<vmem>>, vector<16x65xf32>,
    %25 = vector.extract_strided_slice %5 {offsets = [1, 0], sizes = [1, 128], strides = [1, 1]} : vector<2x256xf32> to vector<1x128xf32>
    %26 = vector.shape_cast %25 : vector<1x128xf32> to vector<1x128xf32>
    %27 = vector.broadcast %26 : vector<1x128xf32> to vector<16x128xf32>
    %28 = vector.extract_strided_slice %5 {offsets = [1, 128], sizes = [1, 128], strides = [1, 1]} : vector<2x256xf32> to vector<1x128xf32>
    %29 = vector.shape_cast %28 : vector<1x128xf32> to vector<1x128xf32>
    %30 = vector.broadcast %29 : vector<1x128xf32> to vector<16x128xf32>
    %31 = arith.mulf %27, %6 : vector<16x128xf32>
    %32 = arith.mulf %30, %7 : vector<16x128xf32>
    %33 = arith.addf %31, %32 : vector<16x128xf32>
    %34 = arith.addf %33, %8 : vector<16x128xf32>
    %cst_14 = arith.constant 0.000000e+00 : f32
    %35 = vector.broadcast %cst_14 : f32 to vector<16x128xf32>
    %36 = arith.maximumf %34, %35 : vector<16x128xf32>
    %cst_15 = arith.constant -1.000000e+00 : f32
    %37 = vector.broadcast %cst_15 : f32 to vector<16x128xf32>
    %38 = arith.minimumf %36, %37 : vector<16x128xf32>
    %39 = vector.extract_strided_slice %38 {offsets = [0, 0], sizes = [16, 65], strides = [1, 1]} : vector<16x128xf32> to vector<16x65xf32>
    %c16_16 = arith.constant 16 : index
    %c0_17 = arith.constant 0 : index
    %40 = vector.load %arg4[%c16_16, %c0_17] : memref<32x65xf32, #tpu.memory_space<vmem>>, vector<16x65xf32>
    tpu.vector_store %arg4[%c16_16, %c0_17], %39 {strides = array<i32>} : memref<32x65xf32, #tpu.memory_space<vmem>>, vector<16x65xf32>,
    return
  }
}

</mosaic_0001>

<bundles_post_ra>
// kernel: forward.1
= control target key start
LH: loop header
LB: loop body
LE: loop exit
PB: predicated region body
PF: predicated region fallthrough
CT: control target
= control target key end

     0   :  { %9 = vsyncpa [#allocation3], 0  ;;  %s1428_s0 = inlined_call_operand.vmem [shape: bf16[2,1024], index: 0, kind: input, shape index: {}]   ;;  %s1429_s1 = inlined_call_operand.hbm [shape: bf16[1024,128], index: 1, kind: input, shape index: {}]   ;;  %s1430_s2 = inlined_call_operand.hbm [shape: bf16[128,256], index: 2, kind: input, shape index: {}]   ;;  %s1431_s3 = inlined_call_operand.hbm [shape: f32[48,128], index: 3, kind: input, shape index: {}]   ;;  %s1432_s4 = inlined_call_operand.hbm [shape: f32[32,65], index: 4, kind: output, shape index: {}]  }
   0x1   :  { %10 = vsyncpa [#allocation6], 0 }
   0x2   :  { %11 = vsyncpa [#allocation4], 0  ;;  %s1351_s15 = smov [#allocation5]  }
   0x3   :  { %s31_s16 = sshll.u32 %s1351_s15, 4  ;;  %s32_s16 = int_to_ptr.vmem [resolvable:$true] %s31_s16 }
   0x4   :  { %s1273_s17 = scalar_lea.vmem %s32_s16, 2048  ;;  %p1278_p1 = scmp.lt.s32.totalorder %s32_s16, %s32_s16 }
   0x5   :  { %p1274_p0 = scmp.ne.s32.totalorder %s32_s16, %s1273_s17  ;;  %p1279_p2 = scmp.lt.s32.totalorder %s1273_s17, %s1273_s17 }
   0x7   :  { %p1280_p3 = por %p1279_p2, %p1278_p1 }
   0x9   :  { %p1281_p4 = pnand %p1280_p3, %p1274_p0 }
   0xb   :  { %1284 = shalt.err (!%p1281_p4)
}
   0xc   :  { %s1352_s18 = smov 128   ;;  %s1353_s19 = smov 8  }
   0xd   :  { %37 = dma.hbm_to_vmem [thread:$0]  %s1430_s2, 2048, %s32_s16, [#allocation6], %s1352_s18, %s1352_s18, %s1353_s19  }
   0xe   :  { %s1354_s22 = smov [#allocation2]  }
   0xf   :  { %s19_s23 = sshll.u32 %s1354_s22, 4  ;;  %s20_s23 = int_to_ptr.vmem [resolvable:$true] %s19_s23 }
  0x10   :  { %s1293_s24 = scalar_lea.vmem %s20_s23, 8192  ;;  %p1298_p6 = scmp.lt.s32.totalorder %s20_s23, %s20_s23 }
  0x11   :  { %p1294_p5 = scmp.ne.s32.totalorder %s20_s23, %s1293_s24  ;;  %p1299_p7 = scmp.lt.s32.totalorder %s1293_s24, %s1293_s24 }
  0x13   :  { %p1300_p8 = por %p1299_p7, %p1298_p6 }
  0x15   :  { %p1301_p9 = pnand %p1300_p8, %p1294_p5 }
  0x17   :  { %1304 = shalt.err (!%p1301_p9)
}
  0x18   :  { %s1355_s25 = smov 64   ;;  %s1356_s26 = smov 4  }
  0x19   :  { %25 = dma.hbm_to_vmem [thread:$0]  %s1429_s1, 8192, %s20_s23, [#allocation3], %s1355_s25, %s1355_s25, %s1356_s26  }
  0x1a   :  { %s1357_s29 = smov [#allocation7]  }
  0x1b   :  { %s43_s30 = sshll.u32 %s1357_s29, 4  ;;  %s44_s30 = int_to_ptr.vmem [resolvable:$true] %s43_s30 }
  0x1c   :  { %s1313_s2 = scalar_lea.vmem %s44_s30, 768  ;;  %p1318_p11 = scmp.lt.s32.totalorder %s44_s30, %s44_s30 }
  0x1d   :  { %p1314_p10 = scmp.ne.s32.totalorder %s44_s30, %s1313_s2  ;;  %p1319_p12 = scmp.lt.s32.totalorder %s1313_s2, %s1313_s2 }
  0x1f   :  { %p1320_p13 = por %p1319_p12, %p1318_p11 }
  0x21   :  { %p1321_p0 = pnand %p1320_p13, %p1314_p10 }
  0x23   :  { %1324 = shalt.err (!%p1321_p0)
}
  0x24   :  { %49 = dma.hbm_to_vmem [thread:$0]  %s1431_s3, 768, %s44_s30, [#allocation6], %s1352_s18, %s1352_s18, %s1353_s19  }
  0x25   :  { %1345 = dma.done.wait [#allocation3], 8192  }
  0x26   :  { %1346 = vsyncadd [#allocation3], 4294959104 }
  0x27   :  { %1347 = dma.done.wait [#allocation6], 2816  }
  0x28   :  { %1348 = vsyncadd [#allocation6], 4294964480  ;;  %v1176_v0 = vld [vmem:[#allocation2 + $0x78] sm:$0xff]   ;;  %v1180_v4 = vld [vmem:[#allocation2 + $0x70] sm:$0xff]   ;;  %v1358_v22 = vmov 1966171168   ;;  %v194_v24 = vlaneseq }
  0x29   :  { %v1177_v1 = vld [vmem:[#allocation2 + $0xf8] sm:$0xff]   ;;  %1078 = vmatprep.subr.bf16.mxu0 %v1176_v0  ;;  %v1181_v5 = vld [vmem:[#allocation2 + $0xf0] sm:$0xff]   ;;  %v1184_v8 = vld [vmem:[#allocation2 + $0x68] sm:$0xff]   ;;  %v192_v23 = vunpack.c.l.s4 %v1358_v22  ;;  %vm955_vm0 = vcmask 531456  }
  0x2a   :  { %v1178_v2 = vld [vmem:[#allocation2 + $0x38] sm:$0xff]   ;;  %1100 = vmatprep.subr.bf16.mxu1 %v1177_v1  ;;  %v1182_v6 = vld [vmem:[#allocation2 + $0x30] sm:$0xff]   ;;  %v1185_v9 = vld [vmem:[#allocation2 + $0xe8] sm:$0xff]   ;;  %v1401_v30 = vshrl.u32 %v194_v24, 7 }
  0x2b   :  { %v1179_v3 = vld [vmem:[#allocation2 + $0xb8] sm:$0xff]   ;;  %1079 = vmatpush3.bf16.msra.mxu0 %v1178_v2  ;;  %v1183_v7 = vld [vmem:[#allocation2 + $0xb0] sm:$0xff]   ;;  %v1186_v10 = vld [vmem:[#allocation2 + $0x28] sm:$0xff]   ;;  %v193_v29 = vunpack.c.0.s8 %v192_v23 }
  0x2c   :  { %1101 = vmatpush3.bf16.msra.mxu1 %v1179_v3  ;;  %1080 = vmatprep.subr.bf16.mxu0 %v1180_v4  ;;  %v1187_v11 = vld [vmem:[#allocation2 + $0xa8] sm:$0xff]   ;;  %v1188_v12 = vld [vmem:[#allocation2 + $0x60] sm:$0xff]   ;;  %v1192_v16 = vld [vmem:[#allocation2 + $0x58] sm:$0xff]  }
  0x2d   :  { %1102 = vmatprep.subr.bf16.mxu1 %v1181_v5  ;;  %v1189_v13 = vld [vmem:[#allocation2 + $0xe0] sm:$0xff]   ;;  %v1193_v17 = vld [vmem:[#allocation2 + $0xd8] sm:$0xff]   ;;  %v1196_v20 = vld [vmem:[#allocation2 + $0x50] sm:$0xff]   ;;  %v1404_v35 = vsub.s32 %v193_v29, %v1401_v30 }
  0x2e   :  { %v1190_v14 = vld [vmem:[#allocation2 + $0x20] sm:$0xff]   ;;  %v1194_v18 = vld [vmem:[#allocation2 + $0x18] sm:$0xff]   ;;  %v1197_v21 = vld [vmem:[#allocation2 + $0xd0] sm:$0xff]  }
  0x2f   :  { %1081 = vmatpush3.bf16.msra.mxu0 %v1182_v6  ;;  %v1191_v15 = vld [vmem:[#allocation2 + $0xa0] sm:$0xff]   ;;  %v1195_v19 = vld [vmem:[#allocation2 + $0x98] sm:$0xff]   ;;  %v1198_v25 = vld [vmem:[#allocation2 + $0x10] sm:$0xff]  }
  0x30   :  { %1103 = vmatpush3.bf16.msra.mxu1 %v1183_v7  ;;  %1082 = vmatprep.subr.bf16.mxu0 %v1184_v8  ;;  %v1199_v26 = vld [vmem:[#allocation2 + $0x90] sm:$0xff]   ;;  %v1200_v27 = vld [vmem:[#allocation2 + $0x48] sm:$0xff]   ;;  %v1204_v33 = vld [vmem:[#allocation2 + $0x40] sm:$0xff]  }
  0x31   :  { %1104 = vmatprep.subr.bf16.mxu1 %v1185_v9  ;;  %v1201_v28 = vld [vmem:[#allocation2 + $0xc8] sm:$0xff]   ;;  %v1205_v34 = vld [vmem:[#allocation2 + $0xc0] sm:$0xff]   ;;  %v1209_v41 = vld [vmem:[#allocation2 + $0x178] sm:$0xff]  }
  0x32   :  { %v1202_v31 = vld [vmem:[#allocation2 + $0x8] sm:$0xff]   ;;  %v1206_v36 = vld [vmem:[#allocation2] sm:$0xff]   ;;  %v1210_v42 = vld [vmem:[#allocation2 + $0x1f8] sm:$0xff]  }
  0x33   :  { %1083 = vmatpush3.bf16.msra.mxu0 %v1186_v10  ;;  %v1203_v32 = vld [vmem:[#allocation2 + $0x88] sm:$0xff]   ;;  %v1207_v37 = vld [vmem:[#allocation2 + $0x80] sm:$0xff]   ;;  %v1211_v46 = vld [vmem:[#allocation2 + $0x138] sm:$0xff]  }
  0x34   :  { %1105 = vmatpush3.bf16.msra.mxu1 %v1187_v11  ;;  %1084 = vmatprep.subr.bf16.mxu0 %v1188_v12  ;;  %v60_v38 = vld [vmem:[%s1428_s0] sm:$0xff]  ;;  %v1212_v48 = vld [vmem:[#allocation2 + $0x1b8] sm:$0xff]   ;;  %v1213_v51 = vld [vmem:[#allocation2 + $0x170] sm:$0xff]   ;;  %s1360_s0 = smov [#allocation8]  }
  0x35   :  { %1106 = vmatprep.subr.bf16.mxu1 %v1189_v13  ;;  %v190_v39 = vcombine.high %v60_v38, %v60_v38  ;;  %v197_v40 = vrot.slane %v60_v38, %v1404_v35  ;;  %v1214_v53 = vld [vmem:[#allocation2 + $0x1f0] sm:$0xff]   ;;  %v1217_v58 = vld [vmem:[#allocation2 + $0x168] sm:$0xff]   ;;  %v1221_v62 = vld [vmem:[#allocation2 + $0x160] sm:$0xff]   ;;  %s985_s7 = sshll.u32 %s1360_s0, 4  ;;  %s986_s7 = int_to_ptr.vmem [resolvable:$true] %s985_s7 }
  0x36   :  { %v1215_v55 = vld [vmem:[#allocation2 + $0x130] sm:$0xff]   ;;  %v1218_v59 = vld [vmem:[#allocation2 + $0x1e8] sm:$0xff]   ;;  %v1222_v63 = vld [vmem:[#allocation2 + $0x1e0] sm:$0xff]   ;;  %s1325_s8 = scalar_lea.vmem %s986_s7, 512  ;;  %p1330_p2 = scmp.lt.s32.totalorder %s986_s7, %s986_s7 }
  0x37   :  { %1085 = vmatpush3.bf16.msra.mxu0 %v1190_v14  ;;  %v205_v43 = vcombine.high %v197_v40, %v197_v40  ;;  %v213_v44 = vrot.slane %v197_v40, %v1404_v35  ;;  %v1412_v45 = vrot.slane %v190_v39, %v1404_v35  ;;  %v1216_v56 = vld [vmem:[#allocation2 + $0x1b0] sm:$0xff]   ;;  %v1219_v60 = vld [vmem:[#allocation2 + $0x128] sm:$0xff]   ;;  %v1223_v0 = vld [vmem:[#allocation2 + $0x120] sm:$0xff]   ;;  %p1326_p1 = scmp.ne.s32.totalorder %s986_s7, %s1325_s8  ;;  %p1331_p3 = scmp.lt.s32.totalorder %s1325_s8, %s1325_s8 }
  0x38   :  { %1107 = vmatpush3.bf16.msra.mxu1 %v1191_v15  ;;  %1086 = vmatprep.subr.bf16.mxu0 %v1192_v16  ;;  %v1220_v61 = vld [vmem:[#allocation2 + $0x1a8] sm:$0xff]   ;;  %v1224_v1 = vld [vmem:[#allocation2 + $0x1a0] sm:$0xff]   ;;  %v1225_v2 = vld [vmem:[#allocation2 + $0x158] sm:$0xff]  }
  0x39   :  { %1108 = vmatprep.subr.bf16.mxu1 %v1193_v17  ;;  %v227_v47 = vrot.slane %v205_v43, %v1404_v35  ;;  %v206_v49 = vcombine.high %v1412_v45, %v1412_v45  ;;  %v235_v50 = vcombine.high %v213_v44, %v213_v44  ;;  %v1226_v3 = vld [vmem:[#allocation2 + $0x1d8] sm:$0xff]   ;;  %v1229_v6 = vld [vmem:[#allocation2 + $0x150] sm:$0xff]   ;;  %v1233_v10 = vld [vmem:[#allocation2 + $0x148] sm:$0xff]   ;;  %p1332_p4 = por %p1331_p3, %p1330_p2 }
  0x3a   :  { %v1227_v4 = vld [vmem:[#allocation2 + $0x118] sm:$0xff]   ;;  %v1230_v7 = vld [vmem:[#allocation2 + $0x1d0] sm:$0xff]   ;;  %v1234_v11 = vld [vmem:[#allocation2 + $0x1c8] sm:$0xff]  }
  0x3b   :  { %1087 = vmatpush3.bf16.msra.mxu0 %v1194_v18  ;;  %663 = vmatprep.mubr.bf16.mxu0 %v227_v47  ;;  %v237_v52 = vcombine.high %v227_v47, %v227_v47  ;;  %v234_v54 = vrot.slane %v206_v49, %v1404_v35  ;;  %v1228_v5 = vld [vmem:[#allocation2 + $0x198] sm:$0xff]   ;;  %v1231_v8 = vld [vmem:[#allocation2 + $0x110] sm:$0xff]   ;;  %v1235_v12 = vld [vmem:[#allocation2 + $0x108] sm:$0xff]   ;;  %v220_v18 = vrot.slane %v1412_v45, %v1404_v35  ;;  %p1333_p5 = pnand %p1332_p4, %p1326_p1 }
  0x3c   :  { %1109 = vmatpush3.bf16.msra.mxu1 %v1195_v19  ;;  %1088 = vmatprep.subr.bf16.mxu0 %v1196_v20  ;;  %v1232_v9 = vld [vmem:[#allocation2 + $0x190] sm:$0xff]   ;;  %v1236_v13 = vld [vmem:[#allocation2 + $0x188] sm:$0xff]   ;;  %v1237_v14 = vld [vmem:[#allocation2 + $0x140] sm:$0xff]  }
  0x3d   :  { %1110 = vmatprep.subr.bf16.mxu1 %v1197_v21  ;;  %703 = vmatprep.mubr.bf16.mxu1 %v237_v52  ;;  %v238_v57 = vcombine.high %v234_v54, %v234_v54  ;;  %v1238_v15 = vld [vmem:[#allocation2 + $0x1c0] sm:$0xff]   ;;  %v236_v19 = vcombine.high %v220_v18, %v220_v18  ;;  %v1241_v20 = vld [vmem:[#allocation5 + $0x70] ss:$8 sps:$4 sm:$0xff]   ;;  %v1243_v21 = vld [vmem:[#allocation5 + $0x74] ss:$8 sps:$4 sm:$0xff]  }
  0x3e   :  { %v1239_v16 = vld [vmem:[#allocation2 + $0x100] sm:$0xff]   ;;  %v1249_v24 = vld [vmem:[#allocation5 + $0x54] ss:$8 sps:$4 sm:$0xff]   ;;  %v1253_v29 = vld [vmem:[#allocation5 + $0x30] ss:$8 sps:$4 sm:$0xff]  }
  0x3f   :  { %1089 = vmatpush3.bf16.msra.mxu0 %v1198_v25  ;;  %v1240_v17 = vld [vmem:[#allocation2 + $0x180] sm:$0xff]   ;;  %v1247_v25 = vld [vmem:[#allocation5 + $0x50] ss:$8 sps:$4 sm:$0xff]  }
  0x40   :  { %1111 = vmatpush3.bf16.msra.mxu1 %v1199_v26  ;;  %1090 = vmatprep.subr.bf16.mxu0 %v1200_v27  ;;  %v1246_v22 = vld [vmem:[#allocation5 + $0x64] ss:$8 sps:$4 sm:$0xff]   ;;  %v1244_v23 = vld [vmem:[#allocation5 + $0x60] ss:$8 sps:$4 sm:$0xff]  }
  0x41   :  { %1112 = vmatprep.subr.bf16.mxu1 %v1201_v28  ;;  %v1252_v26 = vld [vmem:[#allocation5 + $0x44] ss:$8 sps:$4 sm:$0xff]   ;;  %v1250_v27 = vld [vmem:[#allocation5 + $0x40] ss:$8 sps:$4 sm:$0xff]   ;;  %v1255_v28 = vld [vmem:[#allocation5 + $0x34] ss:$8 sps:$4 sm:$0xff]  }
  0x42   :  { %v1264_v35 = vld [vmem:[#allocation5 + $0x4] ss:$8 sps:$4 sm:$0xff]  }
  0x43   :  { %1091 = vmatpush3.bf16.msra.mxu0 %v1202_v31  ;;  %v1258_v31 = vld [vmem:[#allocation5 + $0x24] ss:$8 sps:$4 sm:$0xff]  }
  0x44   :  { %1113 = vmatpush3.bf16.msra.mxu1 %v1203_v32  ;;  %1092 = vmatprep.subr.bf16.mxu0 %v1204_v33  ;;  %v1256_v32 = vld [vmem:[#allocation5 + $0x20] ss:$8 sps:$4 sm:$0xff]   ;;  %v1261_v33 = vld [vmem:[#allocation5 + $0x14] ss:$8 sps:$4 sm:$0xff]  }
  0x45   :  { %1114 = vmatprep.subr.bf16.mxu1 %v1205_v34  ;;  %v1259_v34 = vld [vmem:[#allocation5 + $0x10] ss:$8 sps:$4 sm:$0xff]  }
  0x47   :  { %1093 = vmatpush3.bf16.msra.mxu0 %v1206_v36  ;;  %v1262_v36 = vld [vmem:[#allocation5] ss:$8 sps:$4 sm:$0xff]  }
  0x48   :  { %1115 = vmatpush3.bf16.msra.mxu1 %v1207_v37  ;;  %1122 = vmatprep.subr.bf16.mxu0 %v1209_v41  ;;  %v1359_v37 = vmov 0  }
  0x49   :  { %1144 = vmatprep.subr.bf16.mxu1 %v1210_v42 }
  0x4a   :  { %664 = vmatmul.mubr.bf16.vlgmr.msra.gmra.mxu0 %v213_v44 }
  0x4b   :  { %1123 = vmatpush3.bf16.msra.mxu0 %v1211_v46  ;;  %704 = vmatmul.mubr.bf16.vlgmr.msra.gmra.mxu1 %v235_v50 }
  0x4c   :  { %1124 = vmatprep.subr.bf16.mxu0 %v1213_v51  ;;  %1145 = vmatpush3.bf16.msra.mxu1 %v1212_v48 }
  0x4d   :  { %743 = vmatprep.mubr.bf16.mxu0 %v234_v54  ;;  %1146 = vmatprep.subr.bf16.mxu1 %v1214_v53 }
  0x4e   :  { %783 = vmatprep.mubr.bf16.mxu1 %v238_v57 }
  0x4f   :  { %1125 = vmatpush3.bf16.msra.mxu0 %v1215_v55 }
  0x50   :  { %1126 = vmatprep.subr.bf16.mxu0 %v1217_v58  ;;  %1147 = vmatpush3.bf16.msra.mxu1 %v1216_v56 }
  0x51   :  { %1148 = vmatprep.subr.bf16.mxu1 %v1218_v59 }
  0x53   :  { %1127 = vmatpush3.bf16.msra.mxu0 %v1219_v60 }
  0x54   :  { %1128 = vmatprep.subr.bf16.mxu0 %v1221_v62  ;;  %1149 = vmatpush3.bf16.msra.mxu1 %v1220_v61  ;;  %v937_v62 = vsub.s32 0, %v1401_v30 }
  0x55   :  { %1150 = vmatprep.subr.bf16.mxu1 %v1222_v63  ;;  %v960_v63 = vsub.s32 1, %v1401_v30 }
  0x57   :  { %1129 = vmatpush3.bf16.msra.mxu0 %v1223_v0 }
  0x58   :  { %1130 = vmatprep.subr.bf16.mxu0 %v1225_v2  ;;  %1151 = vmatpush3.bf16.msra.mxu1 %v1224_v1 }
  0x59   :  { %1152 = vmatprep.subr.bf16.mxu1 %v1226_v3  ;;  %v929_v3 = vld [vmem:[#allocation7] sm:$0xff] }
  0x5b   :  { %1131 = vmatpush3.bf16.msra.mxu0 %v1227_v4  ;;  %v930_v4 = vld [vmem:[#allocation7 + $0x8] sm:$0xff] }
  0x5c   :  { %1132 = vmatprep.subr.bf16.mxu0 %v1229_v6  ;;  %1153 = vmatpush3.bf16.msra.mxu1 %v1228_v5  ;;  %v931_v6 = vld [vmem:[#allocation7 + $0x10] sm:$0xff] }
  0x5d   :  { %1154 = vmatprep.subr.bf16.mxu1 %v1230_v7  ;;  %v932_v7 = vld [vmem:[#allocation7 + $0x18] sm:$0xff] }
  0x5f   :  { %1133 = vmatpush3.bf16.msra.mxu0 %v1231_v8 }
  0x60   :  { %1134 = vmatprep.subr.bf16.mxu0 %v1233_v10  ;;  %1155 = vmatpush3.bf16.msra.mxu1 %v1232_v9 }
  0x61   :  { %1156 = vmatprep.subr.bf16.mxu1 %v1234_v11 }
  0x63   :  { %1135 = vmatpush3.bf16.msra.mxu0 %v1235_v12 }
  0x64   :  { %1136 = vmatprep.subr.bf16.mxu0 %v1237_v14  ;;  %1157 = vmatpush3.bf16.msra.mxu1 %v1236_v13 }
  0x65   :  { %1158 = vmatprep.subr.bf16.mxu1 %v1238_v15 }
  0x67   :  { %1137 = vmatpush3.bf16.msra.mxu0 %v1239_v16 }
  0x68   :  { %1159 = vmatpush3.bf16.msra.mxu1 %v1240_v17  ;;  %888 = vmatprep.subr.bf16.mxu0 %v1243_v21 }
  0x6a   :  { %744 = vmatmul.mubr.bf16.vlgmr.msra.gmra.mxu0 %v220_v18 }
  0x6b   :  { %784 = vmatmul.mubr.bf16.vlgmr.msra.gmra.mxu1 %v236_v19  ;;  %889 = vmatpush1.bf16.msra.mxu0 %v1241_v20  ;;  %v933_v19 = vld [vmem:[#allocation7 + $0x20] sm:$0xff]  ;;  %v934_v20 = vld [vmem:[#allocation7 + $0x28] sm:$0xff] }
  0x6c   :  { %890 = vmatprep.subr.bf16.mxu0 %v1246_v22  ;;  %920 = vmatprep.mubr.bf16.mxu0 %v1359_v37 }
  0x6f   :  { %891 = vmatpush1.bf16.msra.mxu0 %v1244_v23 }
  0x70   :  { %892 = vmatprep.subr.bf16.mxu0 %v1249_v24 }
  0x73   :  { %893 = vmatpush1.bf16.msra.mxu0 %v1247_v25 }
  0x74   :  { %894 = vmatprep.subr.bf16.mxu0 %v1252_v26 }
  0x77   :  { %895 = vmatpush1.bf16.msra.mxu0 %v1250_v27 }
  0x78   :  { %896 = vmatprep.subr.bf16.mxu0 %v1255_v28 }
  0x7b   :  { %897 = vmatpush1.bf16.msra.mxu0 %v1253_v29 }
  0x7c   :  { %898 = vmatprep.subr.bf16.mxu0 %v1258_v31 }
  0x7f   :  { %899 = vmatpush1.bf16.msra.mxu0 %v1256_v32 }
  0x80   :  { %900 = vmatprep.subr.bf16.mxu0 %v1261_v33 }
  0x83   :  { %901 = vmatpush1.bf16.msra.mxu0 %v1259_v34 }
  0x84   :  { %902 = vmatprep.subr.bf16.mxu0 %v1264_v35 }
  0x87   :  { %903 = vmatpush1.bf16.msra.mxu0 %v1262_v36 }
 0x10a   :  { %v1094_v38 = vpop.f32.mrf.mxu0 }
 0x10b   :  { %v1116_v39 = vpop.f32.mrf.mxu1 }
 0x10c   :  { %v1095_v40 = vpop.f32.mrf.mxu0 }
 0x10d   :  { %v1117_v41 = vpop.f32.mrf.mxu1  ;;  %v1096_v46 = vadd.f32 %v1095_v40, %v1094_v38 }
 0x10e   :  { %v1097_v42 = vpop.f32.mrf.mxu0  ;;  %v1118_v47 = vadd.f32 %v1117_v41, %v1116_v39 }
 0x10f   :  { %v1119_v43 = vpop.f32.mrf.mxu1 }
 0x110   :  { %v1098_v44 = vpop.f32.mrf.mxu0  ;;  %v706_v51 = vadd.f32 %v1118_v47, %v1096_v46 }
 0x111   :  { %v1120_v45 = vpop.f32.mrf.mxu1 }
 0x12a   :  { %v1138_v48 = vpop.f32.mrf.mxu0 }
 0x12b   :  { %v1160_v49 = vpop.f32.mrf.mxu1 }
 0x12c   :  { %v1139_v50 = vpop.f32.mrf.mxu0 }
 0x12d   :  { %v1140_v52 = vadd.f32 %v1139_v50, %v1138_v48  ;;  %v1161_v53 = vpop.f32.mrf.mxu1 }
 0x12e   :  { %v1141_v54 = vpop.f32.mrf.mxu0  ;;  %v1162_v56 = vadd.f32 %v1161_v53, %v1160_v49 }
 0x12f   :  { %v746_v55 = vadd.f32 %v1140_v52, %v706_v51  ;;  %v1163_v57 = vpop.f32.mrf.mxu1 }
 0x130   :  { %v1142_v58 = vpop.f32.mrf.mxu0 }
 0x131   :  { %v786_v59 = vadd.f32 %v1162_v56, %v746_v55  ;;  %v1164_v60 = vpop.f32.mrf.mxu1 }
 0x133   :  { %v791_v61 = vpack.c.bf16 %v786_v59, %v786_v59 }
 0x135   :  { %921 = vmatmul.mubr.bf16.vlgmr.msra.gmra.mxu0 %v791_v61 }
 0x1f5   :  { %v922_v0 = vpop.f32.mrf.mxu0 }
 0x1f6   :  { %v938_v1 = vrot.slane %v922_v0, %v937_v62  ;;  %v961_v2 = vrot.slane %v922_v0, %v960_v63 }
 0x1f7   :  { %v924_v5 = vpop.f32.mrf.mxu0 }
 0x1f8   :  { %v942_v8 = vrot.slane %v924_v5, %v937_v62  ;;  %v965_v9 = vrot.slane %v924_v5, %v960_v63  ;;  %v943_v11 = vmul.f32 %v938_v1, %v929_v3  ;;  %v944_v12 = vmul.f32 %v938_v1, %v930_v4 }
 0x1f9   :  { %v926_v10 = vpop.f32.mrf.mxu0  ;;  %v966_v13 = vmul.f32 %v961_v2, %v929_v3  ;;  %v967_v14 = vmul.f32 %v961_v2, %v930_v4 }
 0x1fa   :  { %v945_v15 = vmul.f32 %v942_v8, %v931_v6  ;;  %v946_v16 = vmul.f32 %v942_v8, %v932_v7  ;;  %v968_v17 = vmul.f32 %v965_v9, %v931_v6  ;;  %v969_v18 = vmul.f32 %v965_v9, %v932_v7 }
 0x1fb   :  { %v927_v30 = vpop.f32.mrf.mxu0 }
 0x1fc   :  { %v947_v21 = vadd.f32 %v945_v15, %v943_v11  ;;  %v948_v22 = vadd.f32 %v946_v16, %v944_v12  ;;  %v970_v23 = vadd.f32 %v968_v17, %v966_v13  ;;  %v971_v24 = vadd.f32 %v969_v18, %v967_v14 }
 0x1fe   :  { %v949_v25 = vadd.f32 %v947_v21, %v933_v19  ;;  %v950_v26 = vadd.f32 %v948_v22, %v934_v20  ;;  %v972_v27 = vadd.f32 %v970_v23, %v933_v19  ;;  %v973_v28 = vadd.f32 %v971_v24, %v934_v20 }
 0x200   :  { %v951_v29 = vmax.f32 %v949_v25, 0.0  ;;  %v952_v31 = vmax.f32 %v950_v26, 0.0  ;;  %v974_v32 = vmax.f32 %v972_v27, 0.0  ;;  %v975_v33 = vmax.f32 %v973_v28, 0.0 }
 0x202   :  { %v953_v34 = vmin.f32 %v951_v29, -1.0  ;;  %v954_v35 = vmin.f32 %v952_v31, -1.0  ;;  %v976_v36 = vmin.f32 %v974_v32, -1.0  ;;  %v977_v37 = vmin.f32 %v975_v33, -1.0 }
 0x204   :  { %956 = vst.msk [vmem:[#allocation8] sm:$0xff] %vm955_vm0, %v953_v34  ;;  %957 = vst.msk [vmem:[#allocation8 + $0x8] sm:$0xff] %vm955_vm0, %v954_v35 }
 0x205   :  { %978 = vst.msk [vmem:[#allocation8 + $0x10] sm:$0xff] %vm955_vm0, %v976_v36  ;;  %979 = vst.msk [vmem:[#allocation8 + $0x18] sm:$0xff] %vm955_vm0, %v977_v37 }
 0x206   :  { %1336 = shalt.err (!%p1333_p5)
}
 0x207   :  { %991 = dma.vmem_to_hbm [thread:$0]  %s986_s7, 512, %s1432_s4, [#allocation4], %s1352_s18, %s1352_s18, %s1353_s19  }
 0x208   :  { %1349 = dma.done.wait [#allocation4], 512  }
 0x209   :  { %1350 = vsyncadd [#allocation4], 4294966784 }
 0x20a   :  { %995 = vsyncpa [#allocation3], 1 }
 0x20b   :  { %996 = vsyncpa [#allocation6], 1 }
 0x20c   :  { %997 = vsyncpa [#allocation4], 1 }

</bundles_post_ra>
